<compile_context>
chip_gen: v7x
topology: tpu7x:2x2x1
jax: 0.10.0
libtpu: 0.0.40
codegen_flags: <defaults>
</compile_context>

<pallas_src>
import functools

import jax
import jax.numpy as jnp
from jax.experimental import pallas as pl
from jax.experimental.pallas import tpu as pltpu


def _corr2d_block_kernel(params_ref, x_ref, o_ref, *, kh, kw, rows_out, ow,
                         use_bias):
    """Cross-correlation on one block that already holds every row it needs.

    params_ref : SMEM (kh*kw + 1,) -- flattened weight taps, bias last
    x_ref      : VMEM (rows_in >= rows_out + kh - 1, W) input rows
    o_ref      : VMEM (rows_out, ow) output rows
    """
    w = [params_ref[i] for i in range(kh * kw)]
    if use_bias:
        acc = jnp.full((rows_out, ow), params_ref[kh * kw], dtype=jnp.float32)
    else:
        acc = jnp.zeros((rows_out, ow), dtype=jnp.float32)
    # kh*kw static taps, unrolled shift-and-scale on the VPU; compute stays
    # hidden behind the HBM DMA for small kernels (see im2col TODO above).
    for a in range(kh):
        for b in range(kw):
            acc = acc + x_ref[a:a + rows_out, b:b + ow] * w[a * kw + b]
    o_ref[...] = acc.astype(o_ref.dtype)


def _corr2d_tiled_kernel(params_ref, xm_ref, xh_ref, o_ref, bot_ref, *, kh, kw,
                         th, ow, use_bias):
    """One (th, ow) output row tile, kh > 1.

    params_ref : SMEM (kh*kw + 1,)  -- flattened weight taps, bias last
    xm_ref     : VMEM (th, W)       -- input rows [i*th, i*th + th)
    xh_ref     : VMEM (8, W)        -- halo rows starting at (i+1)*th (the
                                       index is clamped in-bounds; its content
                                       only matters when it feeds valid rows)
    o_ref      : VMEM (th, ow)      -- output tile (masked/partial at edges)
    bot_ref    : VMEM (16, W)       -- scratch window for the bottom 8 rows
    """
    nw = kh * kw
    w = [params_ref[i] for i in range(nw)]
    top = th - 8

    def init(rows):
        if use_bias:
            return jnp.full((rows, ow), params_ref[nw], dtype=jnp.float32)
        return jnp.zeros((rows, ow), dtype=jnp.float32)

    # Bulk of the tile: output rows [0, th-8) only need input rows [a, a+top)
    # which all lie inside this tile's main block -- no copies, direct taps.
    if top > 0:
        acc = init(top)
        for a in range(kh):
            for b in range(kw):
                acc = acc + xm_ref[a:a + top, b:b + ow] * w[a * kw + b]
        o_ref[0:top, :] = acc.astype(o_ref.dtype)

    # Bottom 8 output rows need main rows [th-8, th) plus the first kh-1 halo
    # rows; assemble only this tiny (16, W) window (not the whole tile).
    bot_ref[0:8, :] = xm_ref[top:th, :]
    bot_ref[8:16, :] = xh_ref[...]
    acc = init(8)
    for a in range(kh):
        for b in range(kw):
            acc = acc + bot_ref[a:a + 8, b:b + ow] * w[a * kw + b]
    o_ref[top:th, :] = acc.astype(o_ref.dtype)


def conv2d_forward(x, weight, bias=None, *, tile_rows=None):
    """Pallas equivalent of Conv2D.forward: corr2d(x, weight) [+ bias]."""
    x = jnp.asarray(x, jnp.float32)
    weight = jnp.asarray(weight, jnp.float32)
    use_bias = bias is not None

    H, W = x.shape
    kh, kw = weight.shape
    oh, ow = H - kh + 1, W - kw + 1
    assert oh >= 1 and ow >= 1
    assert kh - 1 <= 8, "kernel height > 9 not supported by this row tiling"

    # Flatten weight (+ bias) into one tiny 1-D SMEM array (avoids the
    # [8,128]-word padding of a 2-D SMEM ref).
    nw = kh * kw
    params = jnp.zeros((nw + 1,), jnp.float32).at[:nw].set(weight.reshape(-1))
    if use_bias:
        params = params.at[nw].set(jnp.asarray(bias, jnp.float32).reshape(-1)[0])

    itemsize = 4
    single_bytes = (H * W + oh * ow) * itemsize
    use_tiled = oh >= 8 and (tile_rows is not None or single_bytes > (4 << 20))

    if not use_tiled:
        # Small image: one full-array block each way (full dims are exempt from
        # the (8,128) rule). No padding, no partial blocks, no halo.
        kernel = functools.partial(_corr2d_block_kernel, kh=kh, kw=kw,
                                   rows_out=oh, ow=ow, use_bias=use_bias)
        vmem_limit = int(min(max(3 * single_bytes + (2 << 20), 16 << 20),
                             40 << 20))
        return pl.pallas_call(
            kernel,
            out_shape=jax.ShapeDtypeStruct((oh, ow), jnp.float32),
            grid_spec=pltpu.PrefetchScalarGridSpec(
                num_scalar_prefetch=0,
                grid=(1,),
                in_specs=[
                    pl.BlockSpec(memory_space=pltpu.MemorySpace.SMEM),  # params
                    pl.BlockSpec((H, W), lambda i: (0, 0)),             # x
                ],
                out_specs=pl.BlockSpec((oh, ow), lambda i: (0, 0)),
            ),
            compiler_params=pltpu.CompilerParams(
                dimension_semantics=("arbitrary",),
                vmem_limit_bytes=vmem_limit,
            ),
        )(params, x)

    # ---- Row-tiled path -----------------------------------------------------
    if tile_rows is not None:
        th = max(8, (int(tile_rows) // 8) * 8)
    else:
        # Derive the row tile from a VMEM byte budget: double-buffered main
        # input + output blocks per row, plus the fixed halo / scratch cost.
        budget = 24 << 20
        fixed = (2 * 8 * W + 16 * W) * itemsize + 4096
        per_row = (2 * W + 2 * ow) * itemsize
        th = (budget - fixed) // per_row
        th = (min(max(th, 8), 512) // 8) * 8
    th = min(th, (oh // 8) * 8)          # keep output blocks within the array
    num_tiles = -(-oh // th)

    in_specs = [
        pl.BlockSpec(memory_space=pltpu.MemorySpace.SMEM),   # params
        pl.BlockSpec((th, W), lambda i: (i, 0)),             # main input rows
    ]
    operands = [params, x]
    scratch_shapes = []
    halo_bytes = 0
    if kh > 1:
        # Halo: the 8 rows starting at (i+1)*th.  Clamp the block start to the
        # last in-bounds 8-row block of x; whenever the clamp kicks in
        # ((i+1)*th >= H) no valid output row needs those rows, so their
        # content is irrelevant (they only feed masked-out rows >= oh).
        tb = th // 8
        hcap = (H - 1) // 8
        in_specs.append(
            pl.BlockSpec((8, W),
                         lambda i: (jnp.minimum((i + 1) * tb, hcap), 0)))
        operands.append(x)
        scratch_shapes.append(pltpu.VMEM((16, W), jnp.float32))
        halo_bytes = (2 * 8 * W + 16 * W) * itemsize
        kernel = functools.partial(_corr2d_tiled_kernel, kh=kh, kw=kw, th=th,
                                   ow=ow, use_bias=use_bias)
    else:
        # kh == 1: no halo, no scratch -- every tap lives in the main block.
        kernel = functools.partial(_corr2d_block_kernel, kh=kh, kw=kw,
                                   rows_out=th, ow=ow, use_bias=use_bias)

    vmem_need = (2 * th * W + 2 * th * ow) * itemsize + halo_bytes
    vmem_limit = int(min(max(vmem_need + (2 << 20), 16 << 20), 40 << 20))

    return pl.pallas_call(
        kernel,
        out_shape=jax.ShapeDtypeStruct((oh, ow), jnp.float32),
        grid_spec=pltpu.PrefetchScalarGridSpec(
            num_scalar_prefetch=0,
            grid=(num_tiles,),
            in_specs=in_specs,
            out_specs=pl.BlockSpec((th, ow), lambda i: (i, 0)),
            scratch_shapes=scratch_shapes,
        ),
        compiler_params=pltpu.CompilerParams(
            dimension_semantics=("parallel",),
            vmem_limit_bytes=vmem_limit,
        ),
    )(*operands)


def corr2d_ref(x, k):
    """Pure-JAX reference matching the torch corr2d loop."""
    kh, kw = k.shape
    oh, ow = x.shape[0] - kh + 1, x.shape[1] - kw + 1
    out = jnp.zeros((oh, ow), jnp.float32)
    for a in range(kh):
        for b in range(kw):
            out = out + x[a:a + oh, b:b + ow] * k[a, b]
    return out


if __name__ == "__main__":
    key = jax.random.PRNGKey(0)
    k_w, k_x1, k_x2, k_x3 = jax.random.split(key, 4)

    # Case 1: the spec's literal example -- K = [[1, -1]] on X = ones(6, 8).
    K = jnp.array([[1.0, -1.0]], dtype=jnp.float32)
    X = jnp.ones((6, 8), dtype=jnp.float32)
    y1 = jax.block_until_ready(conv2d_forward(X, K))
    assert y1.shape == (6, 7)
    assert jnp.allclose(y1, corr2d_ref(X, K), atol=1e-5, rtol=1e-5)

    # Case 2: the Conv2D module, kernel_size=(2, 2), zero bias, 16x16 input.
    weight = jax.random.uniform(k_w, (2, 2), dtype=jnp.float32)   # torch.rand
    bias = jnp.zeros((1,), dtype=jnp.float32)                     # torch.zeros(1)
    x2 = jax.random.normal(k_x1, (16, 16), dtype=jnp.float32)
    y2 = jax.block_until_ready(conv2d_forward(x2, weight, bias))
    assert y2.shape == (15, 15)
    assert jnp.allclose(y2, corr2d_ref(x2, weight) + bias[0], atol=1e-5, rtol=1e-5)

    # Case 3: force the row-tiled path (halo across tiles, clamped halo on the
    # last tile, partial/masked last output block).
    x3 = jax.random.normal(k_x2, (40, 200), dtype=jnp.float32)
    y3 = jax.block_until_ready(conv2d_forward(x3, weight, bias, tile_rows=16))
    assert y3.shape == (39, 199)
    assert jnp.allclose(y3, corr2d_ref(x3, weight) + bias[0], atol=1e-5, rtol=1e-5)

    # Case 4: kh == 1 on the row-tiled path (no halo block fetched at all).
    K13 = jnp.array([[0.5, -1.0, 0.25]], dtype=jnp.float32)
    x4 = jax.random.normal(k_x3, (24, 160), dtype=jnp.float32)
    y4 = jax.block_until_ready(conv2d_forward(x4, K13, bias, tile_rows=8))
    assert y4.shape == (24, 158)
    assert jnp.allclose(y4, corr2d_ref(x4, K13) + bias[0], atol=1e-5, rtol=1e-5)

    print("KERNEL_OK")
</pallas_src>

<mosaic_0001>
module attributes {stable_mosaic.version = 11 : i64} {
  func.func @_corr2d_block_kernel(%arg0: i32, %arg1: memref<3xf32, #tpu.memory_space<smem>>, %arg2: memref<6x8xf32, #tpu.memory_space<vmem>>, %arg3: memref<6x7xf32, #tpu.memory_space<vmem>>) attributes {dimension_semantics = [#tpu.dimension_semantics<arbitrary>], iteration_bounds = array<i64: 1>, scalar_prefetch = 0 : i64, scratch_operands = 0 : i64, tpu.core_type = #tpu.core_type<tc>, window_params = [{transform_indices = @transform_0, window_bounds = array<i64: 3>}, {pipeline_mode = #tpu.pipeline_mode<synchronous>, transform_indices = @transform_1, window_bounds = array<i64: 6, 8>}, {pipeline_mode = #tpu.pipeline_mode<synchronous>, transform_indices = @transform_2, window_bounds = array<i64: 6, 7>}]} {
    %c0 = arith.constant 0 : index
    %0 = memref.load %arg1[%c0] : memref<3xf32, #tpu.memory_space<smem>>
    %c1 = arith.constant 1 : index
    %1 = memref.load %arg1[%c1] : memref<3xf32, #tpu.memory_space<smem>>
    %cst = arith.constant 0.000000e+00 : f32
    %2 = vector.broadcast %cst : f32 to vector<6x7xf32>
    %c0_0 = arith.constant 0 : index
    %c0_1 = arith.constant 0 : index
    %3 = vector.load %arg2[%c0_0, %c0_1] : memref<6x8xf32, #tpu.memory_space<vmem>>, vector<6x7xf32>
    %4 = vector.broadcast %0 : f32 to vector<6x7xf32>
    %5 = arith.mulf %3, %4 : vector<6x7xf32>
    %6 = arith.addf %2, %5 : vector<6x7xf32>
    %c0_2 = arith.constant 0 : index
    %c1_3 = arith.constant 1 : index
    %7 = vector.load %arg2[%c0_2, %c1_3] : memref<6x8xf32, #tpu.memory_space<vmem>>, vector<6x7xf32>
    %8 = vector.broadcast %1 : f32 to vector<6x7xf32>
    %9 = arith.mulf %7, %8 : vector<6x7xf32>
    %10 = arith.addf %6, %9 : vector<6x7xf32>
    %c0_4 = arith.constant 0 : index
    %c0_5 = arith.constant 0 : index
    %11 = vector.load %arg3[%c0_4, %c0_5] : memref<6x7xf32, #tpu.memory_space<vmem>>, vector<6x7xf32>
    tpu.vector_store %arg3[%c0_4, %c0_5], %10 {strides = array<i32>} : memref<6x7xf32, #tpu.memory_space<vmem>>, vector<6x7xf32>,
    return
  }
  func.func @transform_0(%arg0: i32) -> i32 {
    %c0_i32 = arith.constant 0 : i32
    %c0_i32_0 = arith.constant 0 : i32
    return %c0_i32 : i32
  }
  func.func @transform_1(%arg0: i32) -> (i32, i32) {
    %c0_i32 = arith.constant 0 : i32
    %c0_i32_0 = arith.constant 0 : i32
    %c0_i32_1 = arith.constant 0 : i32
    return %c0_i32, %c0_i32_0 : i32, i32
  }
  func.func @transform_2(%arg0: i32) -> (i32, i32) {
    %c0_i32 = arith.constant 0 : i32
    %c0_i32_0 = arith.constant 0 : i32
    %c0_i32_1 = arith.constant 0 : i32
    return %c0_i32, %c0_i32_0 : i32, i32
  }
}

</mosaic_0001>

<bundles_post_ra>
// kernel: tpu_custom_call.1
= control target key start
LH: loop header
LB: loop body
LE: loop exit
PB: predicated region body
PF: predicated region fallthrough
CT: control target
= control target key end

     0   :  { %7 = vsyncpa [#allocation5], 0  ;;  %s186_s0 = inlined_call_operand.hbm [shape: f32[3], index: 0, kind: input, shape index: {}]   ;;  %s187_s1 = inlined_call_operand.hbm [shape: f32[6,8], index: 1, kind: input, shape index: {}]   ;;  %s188_s2 = inlined_call_operand.hbm [shape: f32[6,7], index: 2, kind: output, shape index: {}]  }
   0x1   :  { %8 = vsyncpa [#allocation3], 0 }
   0x2   :  { %9 = vsyncpa [#allocation4], 0  ;;  %s71_s11 = scalar_lea.hbm %s186_s0, 16 }
   0x3   :  { %p72_p0 = scmp.ne.s32.totalorder %s186_s0, %s71_s11  ;;  %p75_p1 = scmp.lt.u32.totalorder %s71_s11, %s186_s0 }
   0x5   :  { %p77_p2 = pnand %p75_p1, %p72_p0 }
   0x7   :  { %80 = shalt.err (!%p77_p2)
}
   0x8   :  { %s131_s16 = smov [#allocation2]   ;;  %s132_s19 = smov [#allocation6]  }
   0x9   :  { %17 = dma.hbm_to_smem %s186_s0, 16, %s131_s16, [#allocation5]  }
   0xa   :  { %s24_s20 = sshll.u32 %s132_s19, 4  ;;  %s81_s23 = scalar_lea.hbm %s187_s1, 128  ;;  %s25_s20 = int_to_ptr.vmem [resolvable:$true] %s24_s20 }
   0xb   :  { %p82_p3 = scmp.ne.s32.totalorder %s187_s1, %s81_s23  ;;  %p85_p4 = scmp.lt.u32.totalorder %s81_s23, %s187_s1 }
   0xd   :  { %p87_p5 = pnand %p85_p4, %p82_p3 }
   0xf   :  { %90 = shalt.err (!%p87_p5)
}
  0x10   :  { %s91_s28 = scalar_lea.vmem %s25_s20, 128  ;;  %p96_p7 = scmp.lt.s32.totalorder %s25_s20, %s25_s20 }
  0x11   :  { %p92_p6 = scmp.ne.s32.totalorder %s25_s20, %s91_s28  ;;  %p97_p8 = scmp.lt.s32.totalorder %s91_s28, %s91_s28 }
  0x13   :  { %p98_p9 = por %p97_p8, %p96_p7 }
  0x15   :  { %p99_p10 = pnand %p98_p9, %p92_p6 }
  0x17   :  { %102 = shalt.err (!%p99_p10)
}
  0x18   :  { %27 = dma.hbm_to_vmem [thread:$0]  %s187_s1, 128, %s25_s20, [#allocation3]  }
  0x19   :  { %125 = dma.done.wait [#allocation5], 16  }
  0x1a   :  { %126 = vsyncadd [#allocation5], 4294967280 }
  0x1b   :  { %127 = dma.done.wait [#allocation3], 128  }
  0x1c   :  { %128 = vsyncadd [#allocation3], 4294967168 }
  0x1d   :  { %34 = sfence }
  0x1e   :  { %s66_s30 = sld [smem:[#allocation2 + $0x1]]  ;;  %v37_v0 = vld [vmem:[#allocation6] sm:$0x3f]  ;;  %s133_s3 = smov 127   ;;  %vm48_vm0 = vcmask 54272  }
  0x1f   :  { %s35_s4 = sld [smem:[#allocation2]]  ;;  %s134_s5 = smov [#allocation7]  }
  0x20   :  { %s56_s6 = sshll.u32 %s134_s5, 4  ;;  %s57_s6 = int_to_ptr.vmem [resolvable:$true] %s56_s6 }
  0x21   :  { %s103_s1 = scalar_lea.vmem %s57_s6, 128  ;;  %p108_p12 = scmp.lt.s32.totalorder %s57_s6, %s57_s6 }
  0x22   :  { %p104_p11 = scmp.ne.s32.totalorder %s57_s6, %s103_s1  ;;  %p109_p13 = scmp.lt.s32.totalorder %s103_s1, %s103_s1 }
  0x24   :  { %v41_v1 = vstv %s66_s30  ;;  %p110_p0 = por %p109_p13, %p108_p12 }
  0x25   :  { %v42_v2 = vmul.f32 %v41_v1, %v37_v0  ;;  %v38_v3 = vstv %s35_s4 }
  0x26   :  { %v39_v4 = vmul.f32 %v38_v3, %v37_v0  ;;  %p111_p1 = pnand %p110_p0, %p104_p11 }
  0x27   :  { %44 = vrot.lane.b32.xlu0 %v42_v2, %s133_s3 }
  0x99   :  { %v45_v5 = vpop.permute.xlu0 %44 }
  0x9a   :  { %v47_v6 = vadd.f32 %v45_v5, %v39_v4 }
  0x9c   :  { %49 = vst.msk [vmem:[#allocation7] sm:$0x3f] %vm48_vm0, %v47_v6 }
  0x9d   :  { %114 = shalt.err (!%p111_p1)
}
  0x9e   :  { %s115_s9 = scalar_lea.hbm %s188_s2, 128 }
  0x9f   :  { %p116_p2 = scmp.ne.s32.totalorder %s188_s2, %s115_s9  ;;  %p119_p3 = scmp.lt.u32.totalorder %s115_s9, %s188_s2 }
  0xa1   :  { %p121_p4 = pnand %p119_p3, %p116_p2 }
  0xa3   :  { %124 = shalt.err (!%p121_p4)
}
  0xa4   :  { %59 = dma.vmem_to_hbm [thread:$0]  %s57_s6, 128, %s188_s2, [#allocation4]  }
  0xa5   :  { %129 = dma.done.wait [#allocation4], 128  }
  0xa6   :  { %130 = vsyncadd [#allocation4], 4294967168 }
  0xa7   :  { %63 = vsyncpa [#allocation3], 1 }
  0xa8   :  { %64 = vsyncpa [#allocation4], 1 }
  0xa9   :  { %65 = vsyncpa [#allocation5], 1 }

</bundles_post_ra>
